<compile_context>
chip_gen: v7x
topology: tpu7x:2x2x1
jax: 0.10.0
libtpu: 0.0.40
codegen_flags: <defaults>
</compile_context>

<pallas_src>
import math

import jax
import jax.numpy as jnp
from jax.experimental import pallas as pl
from jax.experimental.pallas import tpu as pltpu


def _round_up(x, m):
    return ((x + m - 1) // m) * m


def _gwl_kernel(x_ref, w_ref, b_ref, o_ref):
    # x_ref: (TB, Cp, Dp)  w_ref: (1, Cp, Dp)  b_ref: (1, Cp)  o_ref: (TB, Cp)
    x = x_ref[...].astype(jnp.float32)
    w = w_ref[...].astype(jnp.float32)          # broadcast over batch tile
    red = jnp.sum(x * w, axis=-1)               # (TB, Cp) lane reduction (XLU)
    o_ref[...] = (red + b_ref[...].astype(jnp.float32)).astype(o_ref.dtype)


def _gwl_kernel_nobias(x_ref, w_ref, o_ref):
    x = x_ref[...].astype(jnp.float32)
    w = w_ref[...].astype(jnp.float32)
    o_ref[...] = jnp.sum(x * w, axis=-1).astype(o_ref.dtype)


def _choose_batch_tile(B, Cp, Dp, itemsize, budget_bytes):
    """Largest multiple-of-8 batch tile whose x block stays under budget."""
    row_bytes = Cp * Dp * itemsize
    tb = max(8, (budget_bytes // max(row_bytes, 1)) // 8 * 8)
    tb = min(tb, _round_up(max(B, 1), 8))       # never bigger than padded batch
    return int(tb)


def group_wise_linear(x, weight, bias=None, *, x_tile_budget_bytes=8 * 1024 * 1024):
    """x: (B, C, D), weight: (1, C, D), bias: (1, C) or None.  Returns (B, C)."""
    B, C, D = x.shape
    out_dtype = x.dtype
    itemsize = jnp.dtype(x.dtype).itemsize

    # Pad to TPU-friendly extents: C -> multiple of 8 (sublane), D -> multiple
    # of 128 (lane).  Zero padding is exact for the sum-reduction.
    Cp = _round_up(C, 8)
    Dp = _round_up(D, 128)
    TB = _choose_batch_tile(B, Cp, Dp, itemsize, x_tile_budget_bytes)
    Bp = _round_up(B, TB)
    # TODO(synk): for very large num_class*hidden_dim (weight block > ~16 MiB)
    # add a second grid axis over C; not needed for Q2L-scale shapes.

    x_p = jnp.pad(x, ((0, Bp - B), (0, Cp - C), (0, Dp - D)))
    w_p = jnp.pad(weight, ((0, 0), (0, Cp - C), (0, Dp - D)))

    grid = (Bp // TB,)
    out_shape = jax.ShapeDtypeStruct((Bp, Cp), out_dtype)
    compiler_params = pltpu.CompilerParams(
        dimension_semantics=("parallel",),
        vmem_limit_bytes=48 * 1024 * 1024,
    )

    x_spec = pl.BlockSpec((TB, Cp, Dp), lambda i: (i, 0, 0))
    w_spec = pl.BlockSpec((1, Cp, Dp), lambda i: (0, 0, 0))   # resident across grid
    o_spec = pl.BlockSpec((TB, Cp), lambda i: (i, 0))

    if bias is not None:
        b_p = jnp.pad(bias, ((0, 0), (0, Cp - C)))
        b_spec = pl.BlockSpec((1, Cp), lambda i: (0, 0))      # resident across grid
        out = pl.pallas_call(
            _gwl_kernel,
            out_shape=out_shape,
            grid=grid,
            in_specs=[x_spec, w_spec, b_spec],
            out_specs=o_spec,
            compiler_params=compiler_params,
        )(x_p, w_p, b_p)
    else:
        out = pl.pallas_call(
            _gwl_kernel_nobias,
            out_shape=out_shape,
            grid=grid,
            in_specs=[x_spec, w_spec],
            out_specs=o_spec,
            compiler_params=compiler_params,
        )(x_p, w_p)

    return out[:B, :C]


def init_params(key, num_class, hidden_dim, use_bias=True):
    """Deterministic re-implementation of GroupWiseLinear.reset_parameters."""
    stdv = 1.0 / math.sqrt(hidden_dim)
    kw, kb = jax.random.split(key)
    weight = jax.random.uniform(
        kw, (1, num_class, hidden_dim), dtype=jnp.float32,
        minval=-stdv, maxval=stdv)
    bias = None
    if use_bias:
        bias = jax.random.uniform(
            kb, (1, num_class), dtype=jnp.float32, minval=-stdv, maxval=stdv)
    return weight, bias


if __name__ == "__main__":
    key = jax.random.PRNGKey(0)
    k_x, k_p = jax.random.split(key)

    batch = 2
    num_class = 8
    hidden_dim = 32

    x = jax.random.normal(k_x, (batch, num_class, hidden_dim), dtype=jnp.float32)
    weight, bias = init_params(k_p, num_class, hidden_dim, use_bias=True)

    out = group_wise_linear(x, weight, bias)
    out = jax.block_until_ready(out)

    # Pure-JAX reference check
    ref = (weight * x).sum(-1) + bias
    assert out.shape == (batch, num_class)
    assert jnp.allclose(out, ref, atol=1e-5, rtol=1e-5), "mismatch vs reference"

    # Also exercise the no-bias path once.
    out_nb = jax.block_until_ready(group_wise_linear(x, weight, None))
    ref_nb = (weight * x).sum(-1)
    assert jnp.allclose(out_nb, ref_nb, atol=1e-5, rtol=1e-5), "mismatch (no bias)"

    print("KERNEL_OK")
</pallas_src>

<mosaic_0001>
module attributes {stable_mosaic.version = 11 : i64} {
  func.func @_gwl_kernel(%arg0: i32, %arg1: memref<8x8x128xf32, #tpu.memory_space<vmem>>, %arg2: memref<1x8x128xf32, #tpu.memory_space<vmem>>, %arg3: memref<1x8xf32, #tpu.memory_space<vmem>>, %arg4: memref<8x8xf32, #tpu.memory_space<vmem>>) attributes {dimension_semantics = [#tpu.dimension_semantics<parallel>], iteration_bounds = array<i64: 1>, scalar_prefetch = 0 : i64, scratch_operands = 0 : i64, tpu.core_type = #tpu.core_type<tc>, window_params = [{transform_indices = @transform_0, window_bounds = array<i64: 8, 8, 128>}, {pipeline_mode = #tpu.pipeline_mode<synchronous>, transform_indices = @transform_1, window_bounds = array<i64: 1, 8, 128>}, {pipeline_mode = #tpu.pipeline_mode<synchronous>, transform_indices = @transform_2, window_bounds = array<i64: 1, 8>}, {transform_indices = @transform_3, window_bounds = array<i64: 8, 8>}]} {
    %c0 = arith.constant 0 : index
    %c0_0 = arith.constant 0 : index
    %c0_1 = arith.constant 0 : index
    %0 = vector.load %arg1[%c0, %c0_0, %c0_1] : memref<8x8x128xf32, #tpu.memory_space<vmem>>, vector<8x8x128xf32>
    %c0_2 = arith.constant 0 : index
    %c0_3 = arith.constant 0 : index
    %c0_4 = arith.constant 0 : index
    %1 = vector.load %arg2[%c0_2, %c0_3, %c0_4] : memref<1x8x128xf32, #tpu.memory_space<vmem>>, vector<1x8x128xf32>
    %2 = vector.broadcast %1 : vector<1x8x128xf32> to vector<8x8x128xf32>
    %3 = arith.mulf %0, %2 : vector<8x8x128xf32>
    %cst = arith.constant dense<0.000000e+00> : vector<8x8xf32>
    %4 = vector.multi_reduction <add>, %3, %cst [2] : vector<8x8x128xf32> to vector<8x8xf32>
    %c0_5 = arith.constant 0 : index
    %c0_6 = arith.constant 0 : index
    %5 = vector.load %arg3[%c0_5, %c0_6] : memref<1x8xf32, #tpu.memory_space<vmem>>, vector<1x8xf32>
    %6 = vector.broadcast %5 : vector<1x8xf32> to vector<8x8xf32>
    %7 = arith.addf %4, %6 : vector<8x8xf32>
    %c0_7 = arith.constant 0 : index
    %c0_8 = arith.constant 0 : index
    %8 = vector.load %arg4[%c0_7, %c0_8] : memref<8x8xf32, #tpu.memory_space<vmem>>, vector<8x8xf32>
    tpu.vector_store %arg4[%c0_7, %c0_8], %7 {strides = array<i32>} : memref<8x8xf32, #tpu.memory_space<vmem>>, vector<8x8xf32>,
    return
  }
  func.func @transform_0(%arg0: i32) -> (i32, i32, i32) {
    %c0_i32 = arith.constant 0 : i32
    %c0_i32_0 = arith.constant 0 : i32
    %c0_i32_1 = arith.constant 0 : i32
    return %arg0, %c0_i32, %c0_i32_0 : i32, i32, i32
  }
  func.func @transform_1(%arg0: i32) -> (i32, i32, i32) {
    %c0_i32 = arith.constant 0 : i32
    %c0_i32_0 = arith.constant 0 : i32
    %c0_i32_1 = arith.constant 0 : i32
    %c0_i32_2 = arith.constant 0 : i32
    return %c0_i32, %c0_i32_0, %c0_i32_1 : i32, i32, i32
  }
  func.func @transform_2(%arg0: i32) -> (i32, i32) {
    %c0_i32 = arith.constant 0 : i32
    %c0_i32_0 = arith.constant 0 : i32
    %c0_i32_1 = arith.constant 0 : i32
    return %c0_i32, %c0_i32_0 : i32, i32
  }
  func.func @transform_3(%arg0: i32) -> (i32, i32) {
    %c0_i32 = arith.constant 0 : i32
    %c0_i32_0 = arith.constant 0 : i32
    return %arg0, %c0_i32 : i32, i32
  }
}

</mosaic_0001>

<bundles_post_ra>
// kernel: tpu_custom_call.1
= control target key start
LH: loop header
LB: loop body
LE: loop exit
PB: predicated region body
PF: predicated region fallthrough
CT: control target
= control target key end

     0   :  { %8 = vsyncpa [#allocation3], 0  ;;  %s337_s0 = inlined_call_operand.hbm [shape: f32[8,8,128], index: 0, kind: input, shape index: {}]   ;;  %s338_s1 = inlined_call_operand.hbm [shape: f32[1,8,128], index: 1, kind: input, shape index: {}]   ;;  %s339_s2 = inlined_call_operand.vmem [shape: f32[1,8], index: 2, kind: input, shape index: {}]   ;;  %s340_s3 = inlined_call_operand.hbm [shape: f32[8,8], index: 3, kind: output, shape index: {}]  }
   0x1   :  { %9 = vsyncpa [#allocation6], 0 }
   0x2   :  { %10 = vsyncpa [#allocation4], 0  ;;  %s272_s12 = smov [#allocation2]   ;;  %s200_s16 = scalar_lea.hbm %s337_s0, 1024 }
   0x3   :  { %s16_s13 = sshll.u32 %s272_s12, 4  ;;  %p201_p0 = scmp.ne.s32.totalorder %s337_s0, %s200_s16  ;;  %s17_s13 = int_to_ptr.vmem [resolvable:$true] %s16_s13 }
   0x4   :  { %p204_p1 = scmp.lt.u32.totalorder %s200_s16, %s337_s0 }
   0x6   :  { %p206_p2 = pnand %p204_p1, %p201_p0 }
   0x8   :  { %209 = shalt.err (!%p206_p2)
}
   0x9   :  { %s210_s21 = scalar_lea.vmem %s17_s13, 1024  ;;  %p215_p4 = scmp.lt.s32.totalorder %s17_s13, %s17_s13 }
   0xa   :  { %p211_p3 = scmp.ne.s32.totalorder %s17_s13, %s210_s21  ;;  %p216_p5 = scmp.lt.s32.totalorder %s210_s21, %s210_s21 }
   0xc   :  { %p217_p6 = por %p216_p5, %p215_p4 }
   0xe   :  { %p218_p7 = pnand %p217_p6, %p211_p3 }
  0x10   :  { %221 = shalt.err (!%p218_p7)
}
  0x11   :  { %s273_s22 = smov 128   ;;  %s274_s23 = smov 8  }
  0x12   :  { %22 = dma.hbm_to_vmem [thread:$0]  %s337_s0, 1024, %s17_s13, [#allocation3], %s273_s22, %s273_s22, %s274_s23  }
  0x13   :  { %s275_s26 = smov [#allocation5]   ;;  %s222_s30 = scalar_lea.hbm %s338_s1, 128 }
  0x14   :  { %s29_s27 = sshll.u32 %s275_s26, 4  ;;  %p223_p8 = scmp.ne.s32.totalorder %s338_s1, %s222_s30  ;;  %s30_s27 = int_to_ptr.vmem [resolvable:$true] %s29_s27 }
  0x15   :  { %p226_p9 = scmp.lt.u32.totalorder %s222_s30, %s338_s1 }
  0x17   :  { %p228_p10 = pnand %p226_p9, %p223_p8 }
  0x19   :  { %231 = shalt.err (!%p228_p10)
}
  0x1a   :  { %s232_s8 = scalar_lea.vmem %s30_s27, 128  ;;  %p237_p12 = scmp.lt.s32.totalorder %s30_s27, %s30_s27 }
  0x1b   :  { %p233_p11 = scmp.ne.s32.totalorder %s30_s27, %s232_s8  ;;  %p238_p13 = scmp.lt.s32.totalorder %s232_s8, %s232_s8 }
  0x1d   :  { %p239_p0 = por %p238_p13, %p237_p12 }
  0x1f   :  { %p240_p1 = pnand %p239_p0, %p233_p11 }
  0x21   :  { %243 = shalt.err (!%p240_p1)
}
  0x22   :  { %32 = dma.hbm_to_vmem [thread:$0]  %s338_s1, 128, %s30_s27, [#allocation6]  }
  0x23   :  { %266 = dma.done.wait [#allocation3], 1024  }
  0x24   :  { %267 = vsyncadd [#allocation3], 4294966272 }
  0x25   :  { %268 = dma.done.wait [#allocation6], 128  }
  0x26   :  { %269 = vsyncadd [#allocation6], 4294967168  ;;  %v41_v0 = vld [vmem:[#allocation2] sm:$0xff]  ;;  %v43_v2 = vld [vmem:[#allocation2 + $0x10] sm:$0xff]  ;;  %v276_v17 = vmov 0   ;;  %v124_v36 = vlaneseq  ;;  %vm158_vm0 = vcmask 1041409  }
  0x27   :  { %v49_v1 = vld [vmem:[#allocation5] sm:$0xff]  ;;  %v42_v5 = vld [vmem:[#allocation2 + $0x8] sm:$0xff]  ;;  %v44_v6 = vld [vmem:[#allocation2 + $0x18] sm:$0xff]  ;;  %199 = vset.pattern.permute.xlu0 %v276_v17  ;;  %198 = vset.pattern.permute.xlu1 %v276_v17  ;;  %vm160_vm1 = vcmask 1042434   ;;  %vm162_vm2 = vcmask 1043459   ;;  %vm164_vm3 = vcmask 1044484  }
  0x28   :  { %v50_v3 = vmul.f32 %v49_v1, %v41_v0  ;;  %v52_v4 = vmul.f32 %v49_v1, %v43_v2  ;;  %v51_v7 = vmul.f32 %v49_v1, %v42_v5  ;;  %v53_v8 = vmul.f32 %v49_v1, %v44_v6  ;;  %v45_v9 = vld [vmem:[#allocation2 + $0x20] sm:$0xff]  ;;  %v46_v10 = vld [vmem:[#allocation2 + $0x28] sm:$0xff]  ;;  %v47_v13 = vld [vmem:[#allocation2 + $0x30] sm:$0xff] }
  0x29   :  { %v54_v11 = vmul.f32 %v49_v1, %v45_v9  ;;  %v55_v12 = vmul.f32 %v49_v1, %v46_v10  ;;  %v48_v14 = vld [vmem:[#allocation2 + $0x38] sm:$0xff]  ;;  %v56_v15 = vmul.f32 %v49_v1, %v47_v13  ;;  %v191_v18 = vld [vmem:[%s339_s2] ss:$0 sm:$0xff]  ;;  %v125_v38 = vand.u32 127, %v124_v36  ;;  %s277_s2 = smov [#allocation7]  }
  0x2a   :  { %58 = vadd.xlane.f32.xlu0 %v50_v3  ;;  %62 = vadd.xlane.f32.xlu1 %v52_v4  ;;  %v57_v16 = vmul.f32 %v49_v1, %v48_v14  ;;  %v127_v39 = vshrl.u32 %v124_v36, 7  ;;  %vm166_vm4 = vcmask 1045509   ;;  %vm168_vm5 = vcmask 1046534   ;;  %s181_s11 = sshll.u32 %s277_s2, 4  ;;  %s182_s11 = int_to_ptr.vmem [resolvable:$true] %s181_s11 }
  0x2b   :  { %vm170_vm6 = vcmask 1047559   ;;  %vm173_vm7 = vcmask 64512   ;;  %s244_s12 = scalar_lea.vmem %s182_s11, 128  ;;  %p249_p3 = scmp.lt.s32.totalorder %s182_s11, %s182_s11 }
  0x2c   :  { %v128_v41 = vsub.s32 %v125_v38, %v127_v39  ;;  %p245_p2 = scmp.ne.s32.totalorder %s182_s11, %s244_s12  ;;  %p250_p4 = scmp.lt.s32.totalorder %s244_s12, %s244_s12 }
  0x2e   :  { %60 = vadd.xlane.f32.xlu0 %v51_v7  ;;  %64 = vadd.xlane.f32.xlu1 %v53_v8  ;;  %p251_p5 = por %p250_p4, %p249_p3 }
  0x30   :  { %p252_p6 = pnand %p251_p5, %p245_p2 }
  0x32   :  { %66 = vadd.xlane.f32.xlu0 %v54_v11  ;;  %68 = vadd.xlane.f32.xlu1 %v55_v12 }
  0x36   :  { %70 = vadd.xlane.f32.xlu0 %v56_v15  ;;  %72 = vadd.xlane.f32.xlu1 %v57_v16 }
  0x4c   :  { %81 = vbcast.lane.b32.xlu0 %v191_v18, 256 }
  0xb7   :  { %v59_v19 = vpop.xlane.xlu0 %58  ;;  %v63_v22 = vpop.xlane.xlu1 %62 }
  0xbb   :  { %v61_v20 = vpop.xlane.xlu0 %60  ;;  %v65_v24 = vpop.xlane.xlu1 %64 }
  0xbf   :  { %v67_v21 = vpop.xlane.xlu0 %66  ;;  %v69_v31 = vpop.xlane.xlu1 %68 }
  0xc3   :  { %v71_v23 = vpop.xlane.xlu0 %70  ;;  %v73_v34 = vpop.xlane.xlu1 %72 }
  0xc7   :  { %v82_v25 = vpop.permute.xlu0 %81 }
  0xc8   :  { %v87_v26 = vadd.f32 %v82_v25, %v65_v24  ;;  %v84_v27 = vadd.f32 %v82_v25, %v59_v19  ;;  %v90_v28 = vadd.f32 %v82_v25, %v71_v23  ;;  %v85_v29 = vadd.f32 %v82_v25, %v61_v20 }
  0xc9   :  { %v86_v30 = vadd.f32 %v82_v25, %v63_v22  ;;  %v88_v32 = vadd.f32 %v82_v25, %v67_v21  ;;  %v89_v33 = vadd.f32 %v82_v25, %v69_v31  ;;  %v91_v35 = vadd.f32 %v82_v25, %v73_v34 }
  0xca   :  { %110 = vperm.xlu0 %199, %v87_v26   ;;  %101 = vperm.xlu1 %198, %v84_v27  }
  0xce   :  { %119 = vperm.xlu0 %199, %v90_v28   ;;  %104 = vperm.xlu1 %198, %v85_v29  }
  0xd2   :  { %107 = vperm.xlu1 %198, %v86_v30  }
  0xd6   :  { %113 = vperm.xlu1 %198, %v88_v32  }
  0xda   :  { %116 = vperm.xlu1 %198, %v89_v33  }
  0xde   :  { %122 = vperm.xlu1 %198, %v91_v35  }
 0x149   :  { %v102_v37 = vpop.permute.xlu1 %101  ;;  %v111_v45 = vpop.permute.xlu0 %110 }
 0x14a   :  { %v129_v46 = vrot.slane %v102_v37, %v128_v41  ;;  %v141_v51 = vrot.slane %v111_v45, %v128_v41 }
 0x14d   :  { %v105_v40 = vpop.permute.xlu1 %104  ;;  %v120_v53 = vpop.permute.xlu0 %119 }
 0x14e   :  { %v133_v43 = vrot.slane %v105_v40, %v128_v41  ;;  %v153_v58 = vrot.slane %v120_v53, %v128_v41 }
 0x150   :  { %v159_v48 = vsel %vm158_vm0, %v133_v43, %v129_v46 }
 0x151   :  { %v108_v42 = vpop.permute.xlu1 %107 }
 0x152   :  { %v137_v44 = vrot.slane %v108_v42, %v128_v41 }
 0x154   :  { %v161_v49 = vsel %vm160_vm1, %v137_v44, %v159_v48 }
 0x155   :  { %v114_v47 = vpop.permute.xlu1 %113  ;;  %v163_v54 = vsel %vm162_vm2, %v141_v51, %v161_v49 }
 0x156   :  { %v145_v50 = vrot.slane %v114_v47, %v128_v41 }
 0x158   :  { %v165_v56 = vsel %vm164_vm3, %v145_v50, %v163_v54 }
 0x159   :  { %v117_v52 = vpop.permute.xlu1 %116 }
 0x15a   :  { %v149_v55 = vrot.slane %v117_v52, %v128_v41 }
 0x15c   :  { %v167_v57 = vsel %vm166_vm4, %v149_v55, %v165_v56 }
 0x15d   :  { %v123_v59 = vpop.permute.xlu1 %122  ;;  %v169_v61 = vsel %vm168_vm5, %v153_v58, %v167_v57 }
 0x15e   :  { %v157_v60 = vrot.slane %v123_v59, %v128_v41 }
 0x160   :  { %v171_v62 = vsel %vm170_vm6, %v157_v60, %v169_v61 }
 0x161   :  { %174 = vst.msk [vmem:[#allocation7] sm:$0xff] %vm173_vm7, %v171_v62 }
 0x162   :  { %255 = shalt.err (!%p252_p6)
}
 0x163   :  { %s256_s15 = scalar_lea.hbm %s340_s3, 128 }
 0x164   :  { %p257_p7 = scmp.ne.s32.totalorder %s340_s3, %s256_s15  ;;  %p260_p8 = scmp.lt.u32.totalorder %s256_s15, %s340_s3 }
 0x166   :  { %p262_p9 = pnand %p260_p8, %p257_p7 }
 0x168   :  { %265 = shalt.err (!%p262_p9)
}
 0x169   :  { %184 = dma.vmem_to_hbm [thread:$0]  %s182_s11, 128, %s340_s3, [#allocation4]  }
 0x16a   :  { %270 = dma.done.wait [#allocation4], 128  }
 0x16b   :  { %271 = vsyncadd [#allocation4], 4294967168 }
 0x16c   :  { %188 = vsyncpa [#allocation3], 1 }
 0x16d   :  { %189 = vsyncpa [#allocation6], 1 }
 0x16e   :  { %190 = vsyncpa [#allocation4], 1 }

</bundles_post_ra>
